<compile_context>
chip_gen: v7x
topology: tpu7x:2x2x1
jax: 0.10.0
libtpu: 0.0.40
codegen_flags: <defaults>
</compile_context>

<pallas_src>
import numpy as np
import jax
import jax.numpy as jnp
from jax.experimental import pallas as pl
from jax.experimental.pallas import tpu as pltpu


def _make_fused_kernel(n, eye_shape, eye_lane_dense):
    """Build the fused kernel producing both regularizer matrices.

    eye_shape: shape of the eye output block as stored (lane-dense slab or (n, n)).
    """
    rows, cols = eye_shape

    def kernel(omega_ref, ut_ref, eye_out_ref, ut_out_ref):
        # omega_ref: (2,) f32 scalars in SMEM.
        # Streamed path: lane-dense tile of U^T -> one broadcast-mul per vreg,
        # full-width unmasked stores.
        e1 = jnp.exp(jnp.full((1, 1), omega_ref[1], dtype=jnp.float32))
        ut_out_ref[...] = e1 * ut_ref[...]

        # exp(omega[0]) * eye(n): generated in-kernel (write-only, no HBM read).
        # The eye output block is resident across the whole grid (constant
        # index map); populate it once on the first step.  e0's exp lives here
        # too so it is not recomputed on every grid step.
        @pl.when(pl.program_id(0) == 0)
        def _():
            e0 = jnp.exp(jnp.full((1, 1), omega_ref[0], dtype=jnp.float32))
            if eye_lane_dense:
                # Flat index over the (rows, 128) slab; diagonal of eye(n)
                # corresponds to flat % (n + 1) == 0 for flat in [0, n*n).
                flat = (jax.lax.broadcasted_iota(jnp.int32, (rows, cols), 0) * cols
                        + jax.lax.broadcasted_iota(jnp.int32, (rows, cols), 1))
                is_diag = (flat % (n + 1)) == 0
                eye_out_ref[...] = jnp.where(is_diag, e0, jnp.float32(0.0))
            else:
                r = jax.lax.broadcasted_iota(jnp.int32, (rows, cols), 0)
                c = jax.lax.broadcasted_iota(jnp.int32, (rows, cols), 1)
                eye_out_ref[...] = jnp.where(r == c, e0, jnp.float32(0.0))

    return kernel


def regularization_forward(omega_reg, n, U_T, *, ut_row_tile=2048):
    """Compute [exp(omega[0]) * eye(n), exp(omega[1]) * U_T] in one Pallas call."""
    omega = omega_reg.astype(jnp.float32)
    U_T = U_T.astype(jnp.float32)
    ut_rows, ut_cols = U_T.shape
    ut_total = ut_rows * ut_cols

    # ---- Lane-dense layout for the streamed matrix (always): flatten, pad the
    # tail to a multiple of 128, reshape to (., 128).  Padding is sliced off in
    # the wrapper after the call.
    ut_flat = U_T.reshape(-1)
    pad = (-ut_total) % 128
    if pad:
        ut_flat = jnp.concatenate(
            [ut_flat, jnp.zeros((pad,), dtype=jnp.float32)])
    ut_in = ut_flat.reshape(-1, 128)
    ut_r, ut_c = ut_in.shape

    rt = min(ut_row_tile, ut_r)          # large tiles; whole array when small
    grid_len = pl.cdiv(ut_r, rt)         # Pallas masks the padded tail tile

    # ---- Lane-dense eye output whenever n*n is a multiple of 128; fallback to
    # the full (n, n) block otherwise (still a whole-array block -> legal).
    eye_lane_dense = (n * n) % 128 == 0
    eye_shape = ((n * n) // 128, 128) if eye_lane_dense else (n, n)

    cost = pl.CostEstimate(
        flops=ut_total + n * n,                 # broadcast mul + diag select
        transcendentals=2,                      # two exp()
        bytes_accessed=4 * (n * n + 2 * ut_total) + 8,
    )

    eye_out, ut_out = pl.pallas_call(
        _make_fused_kernel(n, eye_shape, eye_lane_dense),
        out_shape=(
            jax.ShapeDtypeStruct(eye_shape, jnp.float32),
            jax.ShapeDtypeStruct((ut_r, ut_c), jnp.float32),
        ),
        grid=(grid_len,),
        in_specs=[
            # omega: whole (2,) array in SMEM — no per-step VMEM DMA.
            pl.BlockSpec(memory_space=pltpu.MemorySpace.SMEM),
            pl.BlockSpec((rt, ut_c), lambda i: (i, 0)),
        ],
        out_specs=(
            pl.BlockSpec(eye_shape, lambda i: (0, 0)),   # resident, written once
            pl.BlockSpec((rt, ut_c), lambda i: (i, 0)),
        ),
        compiler_params=pltpu.CompilerParams(
            # The eye output is written only on step 0 of this axis, so it must
            # be "arbitrary" (write-once resident block), not "parallel".
            dimension_semantics=("arbitrary",)),
        cost_estimate=cost,
    )(omega, ut_in)

    # Undo the layout plumbing (pure reshapes / slices, no compute).
    eye_mat = eye_out.reshape(n, n)
    ut_mat = ut_out.reshape(-1)[:ut_total].reshape(ut_rows, ut_cols)
    return [eye_mat, ut_mat]


def grid_incidence_transposed(h, w):
    """Oriented incidence matrix of an h x w 2-D grid graph, transposed.

    Deterministic replacement for
      nx.incidence_matrix(nx.grid_2d_graph(h, w), oriented=True).todense().T
    (same structure; edge ordering is fixed row-major here).
    Shape: (n_edges, h*w), entries -1 at edge source, +1 at edge target.
    """
    def nid(i, j):
        return i * w + j

    edges = []
    for i in range(h):
        for j in range(w):
            if i + 1 < h:
                edges.append((nid(i, j), nid(i + 1, j)))
            if j + 1 < w:
                edges.append((nid(i, j), nid(i, j + 1)))
    U = np.zeros((len(edges), h * w), dtype=np.float32)
    for e, (u, v) in enumerate(edges):
        U[e, u] = -1.0
        U[e, v] = 1.0
    return U


class Regularization:
    """JAX/Pallas port of the PyTorch Regularization module (forward only)."""

    def __init__(self, n, grid_hw=(28, 28)):
        # Parameter omega_reg initialized deterministically to [0., 0.]
        self.omega_reg = jnp.array([0.0, 0.0], dtype=jnp.float32)
        self.n = n
        self.U_T = jnp.asarray(grid_incidence_transposed(*grid_hw))
        # Dense Rs kept to mirror the PyTorch module's attributes; forward()
        # never streams Rs[0] — the identity is generated inside the kernel.
        self.Rs = [jnp.eye(n, dtype=jnp.float32), self.U_T]
        self.len = sum(int(r.shape[0]) for r in self.Rs)

    def forward(self):
        return regularization_forward(self.omega_reg, self.n, self.U_T)

    def prox(self, t):
        # TODO(synk): prox is a no-op (pass) in the reference module; nothing to port.
        pass


if __name__ == "__main__":
    # Small shapes consistent with the module: n = 64, grid graph 8x8
    # => out[0] is exp(w0)*eye(64) (64, 64), out[1] is exp(w1)*U^T (112, 64).
    key = jax.random.PRNGKey(0)
    n = 64
    module = Regularization(n, grid_hw=(8, 8))
    # Deterministic nonzero omega so exp() is exercised non-trivially.
    module.omega_reg = jax.random.normal(key, (2,), dtype=jnp.float32) * 0.1

    outs = module.forward()
    outs = [jax.block_until_ready(o) for o in outs]

    # Plain-JAX reference check of the forward semantics.
    refs = [jnp.exp(module.omega_reg[0]) * jnp.eye(n, dtype=jnp.float32),
            jnp.exp(module.omega_reg[1]) * module.U_T]
    for o, r in zip(outs, refs):
        assert o.shape == r.shape and o.dtype == jnp.float32
        np.testing.assert_allclose(np.asarray(o), np.asarray(r),
                                   rtol=1e-6, atol=1e-6)

    print("KERNEL_OK")
</pallas_src>

<mosaic_0001>
module attributes {stable_mosaic.version = 11 : i64} {
  func.func @kernel(%arg0: i32, %arg1: memref<2xf32, #tpu.memory_space<smem>>, %arg2: memref<56x128xf32, #tpu.memory_space<vmem>>, %arg3: memref<32x128xf32, #tpu.memory_space<vmem>>, %arg4: memref<56x128xf32, #tpu.memory_space<vmem>>) attributes {dimension_semantics = [#tpu.dimension_semantics<arbitrary>], iteration_bounds = array<i64: 1>, scalar_prefetch = 0 : i64, scratch_operands = 0 : i64, tpu.core_type = #tpu.core_type<tc>, window_params = [{transform_indices = @transform_0, window_bounds = array<i64: 2>}, {transform_indices = @transform_1, window_bounds = array<i64: 56, 128>}, {pipeline_mode = #tpu.pipeline_mode<synchronous>, transform_indices = @transform_2, window_bounds = array<i64: 32, 128>}, {transform_indices = @transform_3, window_bounds = array<i64: 56, 128>}]} {
    %c1 = arith.constant 1 : index
    %0 = memref.load %arg1[%c1] : memref<2xf32, #tpu.memory_space<smem>>
    %1 = vector.broadcast %0 : f32 to vector<1x1xf32>
    %2 = math.exp %1 : vector<1x1xf32>
    %c0 = arith.constant 0 : index
    %c0_0 = arith.constant 0 : index
    %3 = vector.load %arg2[%c0, %c0_0] : memref<56x128xf32, #tpu.memory_space<vmem>>, vector<56x128xf32>
    %4 = vector.broadcast %2 : vector<1x1xf32> to vector<56x128xf32>
    %5 = arith.mulf %4, %3 : vector<56x128xf32>
    %c0_1 = arith.constant 0 : index
    %c0_2 = arith.constant 0 : index
    %6 = vector.load %arg4[%c0_1, %c0_2] : memref<56x128xf32, #tpu.memory_space<vmem>>, vector<56x128xf32>
    tpu.vector_store %arg4[%c0_1, %c0_2], %5 {strides = array<i32>} : memref<56x128xf32, #tpu.memory_space<vmem>>, vector<56x128xf32>,
    %c0_i32 = arith.constant 0 : i32
    %7 = arith.cmpi eq, %arg0, %c0_i32 : i32
    %8 = arith.extui %7 : i1 to i32
    %c0_i32_3 = arith.constant 0 : i32
    %9 = arith.cmpi ne, %8, %c0_i32_3 : i32
    scf.if %9 {
      %c0_4 = arith.constant 0 : index
      %10 = memref.load %arg1[%c0_4] : memref<2xf32, #tpu.memory_space<smem>>
      %11 = vector.broadcast %10 : f32 to vector<1x1xf32>
      %12 = math.exp %11 : vector<1x1xf32>
      %13 = tpu.iota {dimensions = array<i32: 0>} : vector<32x128xi32>
      %c128_i32 = arith.constant 128 : i32
      %14 = vector.broadcast %c128_i32 : i32 to vector<32x128xi32>
      %15 = arith.muli %13, %14 : vector<32x128xi32>
      %16 = tpu.iota {dimensions = array<i32: 1>} : vector<32x128xi32>
      %17 = arith.addi %15, %16 : vector<32x128xi32>
      %c65_i32 = arith.constant 65 : i32
      %c0_i32_5 = arith.constant 0 : i32
      %18 = arith.cmpi eq, %c65_i32, %c0_i32_5 : i32
      %c1_i32 = arith.constant 1 : i32
      %19 = arith.select %18, %c1_i32, %c65_i32 : i32
      %20 = vector.broadcast %19 : i32 to vector<32x128xi32>
      %21 = arith.remsi %17, %20 : vector<32x128xi32>
      %c0_i32_6 = arith.constant 0 : i32
      %22 = vector.broadcast %c0_i32_6 : i32 to vector<32x128xi32>
      %23 = arith.cmpi ne, %21, %22 : vector<32x128xi32>
      %c0_i32_7 = arith.constant 0 : i32
      %24 = vector.broadcast %c0_i32_7 : i32 to vector<32x128xi32>
      %25 = arith.cmpi slt, %21, %24 : vector<32x128xi32>
      %c0_i32_8 = arith.constant 0 : i32
      %26 = arith.cmpi slt, %19, %c0_i32_8 : i32
      %27 = vector.broadcast %26 : i1 to vector<32x128xi1>
      %28 = vector.broadcast %27 : vector<32x128xi1> to vector<32x128xi1>
      %29 = arith.xori %25, %28 : vector<32x128xi1>
      %30 = arith.andi %29, %23 : vector<32x128xi1>
      %31 = vector.broadcast %19 : i32 to vector<32x128xi32>
      %32 = arith.addi %21, %31 : vector<32x128xi32>
      %33 = arith.select %30, %32, %21 : vector<32x128xi1>, vector<32x128xi32>
      %c0_i32_9 = arith.constant 0 : i32
      %34 = vector.broadcast %c0_i32_9 : i32 to vector<32x128xi32>
      %35 = arith.cmpi eq, %33, %34 : vector<32x128xi32>
      %cst = arith.constant 0.000000e+00 : f32
      %36 = vector.shape_cast %12 : vector<1x1xf32> to vector<1x1xf32>
      %37 = vector.broadcast %36 : vector<1x1xf32> to vector<32x128xf32>
      %38 = vector.broadcast %cst : f32 to vector<32x128xf32>
      %39 = arith.select %35, %37, %38 : vector<32x128xi1>, vector<32x128xf32>
      %c0_10 = arith.constant 0 : index
      %c0_11 = arith.constant 0 : index
      %40 = vector.load %arg3[%c0_10, %c0_11] : memref<32x128xf32, #tpu.memory_space<vmem>>, vector<32x128xf32>
      tpu.vector_store %arg3[%c0_10, %c0_11], %39 {strides = array<i32>} : memref<32x128xf32, #tpu.memory_space<vmem>>, vector<32x128xf32>,
    } else {
    }
    return
  }
  func.func @transform_0(%arg0: i32) -> i32 {
    %c0_i32 = arith.constant 0 : i32
    %c0_i32_0 = arith.constant 0 : i32
    return %c0_i32 : i32
  }
  func.func @transform_1(%arg0: i32) -> (i32, i32) {
    %c0_i32 = arith.constant 0 : i32
    %c0_i32_0 = arith.constant 0 : i32
    return %arg0, %c0_i32 : i32, i32
  }
  func.func @transform_2(%arg0: i32) -> (i32, i32) {
    %c0_i32 = arith.constant 0 : i32
    %c0_i32_0 = arith.constant 0 : i32
    %c0_i32_1 = arith.constant 0 : i32
    return %c0_i32, %c0_i32_0 : i32, i32
  }
  func.func @transform_3(%arg0: i32) -> (i32, i32) {
    %c0_i32 = arith.constant 0 : i32
    %c0_i32_0 = arith.constant 0 : i32
    return %arg0, %c0_i32 : i32, i32
  }
}

</mosaic_0001>

<bundles_post_ra>
// kernel: tpu_custom_call.1
= control target key start
LH: loop header
LB: loop body
LE: loop exit
PB: predicated region body
PF: predicated region fallthrough
CT: control target
= control target key end

     0   :  { %9 = vsyncpa [#allocation5], 0  ;;  %s433_s0 = inlined_call_operand.hbm [shape: f32[2], index: 0, kind: input, shape index: {}]   ;;  %s434_s1 = inlined_call_operand.hbm [shape: f32[56,128], index: 1, kind: input, shape index: {}]   ;;  %s435_s2 = inlined_call_operand.hbm [shape: f32[32,128], index: 2, kind: output, shape index: {0}]   ;;  %s436_s3 = inlined_call_operand.hbm [shape: f32[56,128], index: 3, kind: output, shape index: {1}]  }
   0x1   :  { %10 = vsyncpa [#allocation3], 0 }
   0x2   :  { %11 = vsyncpa [#allocation4], 0 }
   0x3   :  { %12 = vsyncpa [#allocation9], 0  ;;  %s221_s14 = scalar_lea.hbm %s433_s0, 16 }
   0x4   :  { %p222_p0 = scmp.ne.s32.totalorder %s433_s0, %s221_s14  ;;  %p225_p1 = scmp.lt.u32.totalorder %s221_s14, %s433_s0 }
   0x6   :  { %p227_p2 = pnand %p225_p1, %p222_p0 }
   0x8   :  { %230 = shalt.err (!%p227_p2)
}
   0x9   :  { %s305_s19 = smov [#allocation2]   ;;  %s306_s22 = smov [#allocation6]  }
   0xa   :  { %20 = dma.hbm_to_smem %s433_s0, 16, %s305_s19, [#allocation5]  }
   0xb   :  { %s26_s23 = sshll.u32 %s306_s22, 4  ;;  %s231_s26 = scalar_lea.hbm %s434_s1, 896  ;;  %s27_s23 = int_to_ptr.vmem [resolvable:$true] %s26_s23 }
   0xc   :  { %p232_p3 = scmp.ne.s32.totalorder %s434_s1, %s231_s26  ;;  %p235_p4 = scmp.lt.u32.totalorder %s231_s26, %s434_s1 }
   0xe   :  { %p237_p5 = pnand %p235_p4, %p232_p3 }
  0x10   :  { %240 = shalt.err (!%p237_p5)
}
  0x11   :  { %s241_s4 = scalar_lea.vmem %s27_s23, 896  ;;  %p246_p7 = scmp.lt.s32.totalorder %s27_s23, %s27_s23 }
  0x12   :  { %p242_p6 = scmp.ne.s32.totalorder %s27_s23, %s241_s4  ;;  %p247_p8 = scmp.lt.s32.totalorder %s241_s4, %s241_s4 }
  0x14   :  { %p248_p9 = por %p247_p8, %p246_p7 }
  0x16   :  { %p249_p10 = pnand %p248_p9, %p242_p6 }
  0x18   :  { %252 = shalt.err (!%p249_p10)
}
  0x19   :  { %s307_s0 = smov 128   ;;  %s308_s5 = smov 8  }
  0x1a   :  { %32 = dma.hbm_to_vmem [thread:$0]  %s434_s1, 896, %s27_s23, [#allocation3], %s307_s0, %s307_s0, %s308_s5  }
  0x1b   :  { %297 = dma.done.wait [#allocation5], 16  }
  0x1c   :  { %298 = vsyncadd [#allocation5], 4294967280 }
  0x1d   :  { %299 = dma.done.wait [#allocation3], 896  }
  0x1e   :  { %300 = vsyncadd [#allocation3], 4294966400 }
  0x1f   :  { %39 = sfence }
  0x20   :  { %s198_s8 = sld [smem:[#allocation2 + $0x1]]  ;;  %v73_v0 = vlaneseq  ;;  %s69_s9 = sld [smem:[#allocation2]]  ;;  %v44_v34 = vld [vmem:[#allocation6] sm:$0xff]  ;;  %v45_v36 = vld [vmem:[#allocation6 + $0x8] sm:$0xff]  ;;  %v46_v37 = vld [vmem:[#allocation6 + $0x10] sm:$0xff] }
  0x21   :  { %v47_v38 = vld [vmem:[#allocation6 + $0x18] sm:$0xff]  ;;  %v48_v39 = vld [vmem:[#allocation6 + $0x20] sm:$0xff]  ;;  %v49_v40 = vld [vmem:[#allocation6 + $0x28] sm:$0xff]  ;;  %s309_s1 = smov [#allocation8]  }
  0x22   :  { %v74_v1 = vshrl.u32 %v73_v0, 7  ;;  %v83_v2 = vand.u32 127, %v73_v0  ;;  %v50_v41 = vld [vmem:[#allocation6 + $0x30] sm:$0xff]  ;;  %s181_s10 = sshll.u32 %s309_s1, 4  ;;  %s390_s10 = int_to_ptr.vmem [resolvable:$true] %s181_s10 }
  0x23   :  { %s253_s11 = scalar_lea.vmem %s390_s10, 896  ;;  %p258_p12 = scmp.lt.s32.totalorder %s390_s10, %s390_s10 }
  0x24   :  { %v78_v3 = vmul.u32 128, %v74_v1  ;;  %v75_v4 = vadd.s32 8, %v74_v1  ;;  %v76_v5 = vadd.s32 16, %v74_v1  ;;  %v77_v6 = vadd.s32 24, %v74_v1  ;;  %p254_p11 = scmp.ne.s32.totalorder %s390_s10, %s253_s11  ;;  %p259_p13 = scmp.lt.s32.totalorder %s253_s11, %s253_s11 }
  0x26   :  { %v41_v7 = vstv %s198_s8  ;;  %v358_v8 = vadd.s32 %v83_v2, %v78_v3  ;;  %v79_v9 = vmul.u32 128, %v75_v4  ;;  %v80_v10 = vmul.u32 128, %v76_v5  ;;  %p260_p0 = por %p259_p13, %p258_p12 }
  0x27   :  { %v42_v11 = vmul.f32 1.442695, %v41_v7  ;;  %v81_v12 = vmul.u32 128, %v77_v6  ;;  %v70_v17 = vstv %s69_s9 }
  0x28   :  { %v89_v13 = vsub.s32 0, %v358_v8  ;;  %v361_v14 = vadd.s32 %v83_v2, %v79_v9  ;;  %v363_v15 = vadd.s32 %v83_v2, %v80_v10  ;;  %v71_v25 = vmul.f32 1.442695, %v70_v17  ;;  %p261_p1 = pnand %p260_p0, %p254_p11 }
  0x29   :  { %217 = vpow2.f32 %v42_v11  ;;  %v365_v16 = vadd.s32 %v83_v2, %v81_v12  ;;  %vm88_vm0 = vcmp.lt.s32.totalorder %v358_v8, 0 }
  0x2a   :  { %v199_v18 = vmin.u32 %v89_v13, %v358_v8  ;;  %v100_v19 = vsub.s32 0, %v361_v14  ;;  %v111_v20 = vsub.s32 0, %v363_v15  ;;  %219 = vpow2.f32 %v71_v25 }
  0x2b   :  { %v122_v21 = vsub.s32 0, %v365_v16 }
  0x2c   :  { %v371_v22 = vmul.u32.u64.low 4228890877, %v199_v18  ;;  %v372_v23 = vmul.u32.u64.high 4228890877, %v199_v18, %v371_v22  ;;  %v200_v24 = vmin.u32 %v100_v19, %v361_v14  ;;  %v201_v26 = vmin.u32 %v111_v20, %v363_v15 }
  0x2d   :  { %v202_v27 = vmin.u32 %v122_v21, %v365_v16 }
  0x2e   :  { %v377_v28 = vmul.u32.u64.low 4228890877, %v200_v24  ;;  %v378_v29 = vmul.u32.u64.high 4228890877, %v200_v24, %v377_v28  ;;  %v380_v30 = vmul.u32.u64.low 4228890877, %v201_v26  ;;  %v381_v31 = vmul.u32.u64.high 4228890877, %v201_v26, %v380_v30 }
  0x2f   :  { %v383_v32 = vmul.u32.u64.low 4228890877, %v202_v27  ;;  %v384_v33 = vmul.u32.u64.high 4228890877, %v202_v27, %v383_v32  ;;  %v94_v35 = vshrl.u32 %v372_v23, 6 }
  0x30   :  { %v105_v43 = vshrl.u32 %v378_v29, 6  ;;  %v116_v45 = vshrl.u32 %v381_v31, 6 }
  0x31   :  { %v95_v42 = vmul.u32 65, %v94_v35  ;;  %v127_v46 = vshrl.u32 %v384_v33, 6 }
  0x32   :  { %v106_v55 = vmul.u32 65, %v105_v43  ;;  %v117_v56 = vmul.u32 65, %v116_v45 }
  0x33   :  { %v218_v44 = vpop.eup %217  ;;  %v96_v54 = vsub.s32 %v199_v18, %v95_v42  ;;  %v128_v58 = vmul.u32 65, %v127_v46 }
  0x34   :  { %v51_v47 = vmul.f32 %v218_v44, %v44_v34  ;;  %v52_v48 = vmul.f32 %v218_v44, %v45_v36  ;;  %v53_v49 = vmul.f32 %v218_v44, %v46_v37  ;;  %v54_v50 = vmul.f32 %v218_v44, %v47_v38 }
  0x35   :  { %v55_v51 = vmul.f32 %v218_v44, %v48_v39  ;;  %v56_v52 = vmul.f32 %v218_v44, %v49_v40  ;;  %v57_v53 = vmul.f32 %v218_v44, %v50_v41  ;;  %v97_v57 = vsub.s32 0, %v96_v54 }
  0x36   :  { %58 = vst [vmem:[#allocation8] sm:$0xff] %v51_v47  ;;  %59 = vst [vmem:[#allocation8 + $0x8] sm:$0xff] %v52_v48  ;;  %v107_v59 = vsub.s32 %v200_v24, %v106_v55  ;;  %v118_v60 = vsub.s32 %v201_v26, %v117_v56 }
  0x37   :  { %60 = vst [vmem:[#allocation8 + $0x10] sm:$0xff] %v53_v49  ;;  %61 = vst [vmem:[#allocation8 + $0x18] sm:$0xff] %v54_v50 }
  0x38   :  { %62 = vst [vmem:[#allocation8 + $0x20] sm:$0xff] %v55_v51  ;;  %63 = vst [vmem:[#allocation8 + $0x28] sm:$0xff] %v56_v52 }
  0x39   :  { %64 = vst [vmem:[#allocation8 + $0x30] sm:$0xff] %v57_v53 }
  0x3a   :  { %264 = shalt.err (!%p261_p1)
}
  0x3b   :  { %s265_s14 = scalar_lea.hbm %s436_s3, 896 }
  0x3c   :  { %p266_p2 = scmp.ne.s32.totalorder %s436_s3, %s265_s14  ;;  %p269_p3 = scmp.lt.u32.totalorder %s265_s14, %s436_s3 }
  0x3e   :  { %p271_p4 = pnand %p269_p3, %p266_p2 }
  0x40   :  { %274 = shalt.err (!%p271_p4)
}
  0x41   :  { %187 = dma.vmem_to_hbm [thread:$0]  %s390_s10, 896, %s436_s3, [#allocation9], %s307_s0, %s307_s0, %s308_s5   ;;  %v98_v61 = vsel %vm88_vm0, %v97_v57, %v96_v54  ;;  %vm99_vm1 = vcmp.lt.s32.totalorder %v361_v14, 0  ;;  %v129_v62 = vsub.s32 %v202_v27, %v128_v58  ;;  %v108_v0 = vsub.s32 0, %v107_v59  ;;  %v220_v1 = vpop.eup %219 }
  0x42   :  { %vm132_vm2 = vcmp.ne.s32.totalorder %v98_v61, 0  ;;  %vm136_vm3 = vcmp.lt.s32.totalorder %v98_v61, 0  ;;  %v144_v63 = vadd.s32 65, %v98_v61  ;;  %vm110_vm5 = vcmp.lt.s32.totalorder %v363_v15, 0  ;;  %s310_s3 = smov [#allocation7]  }
  0x43   :  { %vm140_vm4 = vmand %vm136_vm3, %vm132_vm2  ;;  %v119_v2 = vsub.s32 0, %v118_v60  ;;  %vm121_vm6 = vcmp.lt.s32.totalorder %v365_v16, 0  ;;  %v130_v3 = vsub.s32 0, %v129_v62  ;;  %v109_v5 = vsel %vm99_vm1, %v108_v0, %v107_v59  ;;  %s169_s21 = sshll.u32 %s310_s3, 4  ;;  %s170_s21 = int_to_ptr.vmem [resolvable:$true] %s169_s21 }
  0x44   :  { %v148_v4 = vsel %vm140_vm4, %v144_v63, %v98_v61  ;;  %vm133_vm8 = vcmp.ne.s32.totalorder %v109_v5, 0  ;;  %vm137_vm9 = vcmp.lt.s32.totalorder %v109_v5, 0  ;;  %v145_v6 = vadd.s32 65, %v109_v5  ;;  %s275_s22 = scalar_lea.vmem %s170_s21, 512  ;;  %p280_p6 = scmp.lt.s32.totalorder %s170_s21, %s170_s21 }
  0x45   :  { %vm152_vm7 = vcmp.eq.s32.totalorder %v148_v4, 0  ;;  %vm141_vm10 = vmand %vm137_vm9, %vm133_vm8  ;;  %v120_v8 = vsel %vm110_vm5, %v119_v2, %v118_v60  ;;  %v131_v9 = vsel %vm121_vm6, %v130_v3, %v129_v62  ;;  %p276_p5 = scmp.ne.s32.totalorder %s170_s21, %s275_s22  ;;  %p281_p7 = scmp.lt.s32.totalorder %s275_s22, %s275_s22 }
  0x46   :  { %v156_v7 = vsel %vm152_vm7, %v220_v1, 0.0  ;;  %v149_v10 = vsel %vm141_vm10, %v145_v6, %v109_v5  ;;  %vm134_vm11 = vcmp.ne.s32.totalorder %v120_v8, 0  ;;  %vm138_vm12 = vcmp.lt.s32.totalorder %v120_v8, 0 }
  0x47   :  { %160 = vst [vmem:[#allocation7] sm:$0xff] %v156_v7  ;;  %v146_v11 = vadd.s32 65, %v120_v8  ;;  %vm153_vm13 = vcmp.eq.s32.totalorder %v149_v10, 0  ;;  %vm142_vm14 = vmand %vm138_vm12, %vm134_vm11  ;;  %vm135_vm15 = vcmp.ne.s32.totalorder %v131_v9, 0  ;;  %vm139_vm0 = vcmp.lt.s32.totalorder %v131_v9, 0  ;;  %p282_p8 = por %p281_p7, %p280_p6 }
  0x48   :  { %v147_v12 = vadd.s32 65, %v131_v9  ;;  %v157_v13 = vsel %vm153_vm13, %v220_v1, 0.0  ;;  %vm143_vm1 = vmand %vm139_vm0, %vm135_vm15 }
  0x49   :  { %v150_v14 = vsel %vm142_vm14, %v146_v11, %v120_v8  ;;  %161 = vst [vmem:[#allocation7 + $0x8] sm:$0xff] %v157_v13  ;;  %p283_p9 = pnand %p282_p8, %p276_p5 }
  0x4a   :  { %vm154_vm2 = vcmp.eq.s32.totalorder %v150_v14, 0  ;;  %v151_v15 = vsel %vm143_vm1, %v147_v12, %v131_v9 }
  0x4b   :  { %v158_v16 = vsel %vm154_vm2, %v220_v1, 0.0  ;;  %vm155_vm3 = vcmp.eq.s32.totalorder %v151_v15, 0 }
  0x4c   :  { %162 = vst [vmem:[#allocation7 + $0x10] sm:$0xff] %v158_v16  ;;  %v159_v17 = vsel %vm155_vm3, %v220_v1, 0.0 }
  0x4d   :  { %163 = vst [vmem:[#allocation7 + $0x18] sm:$0xff] %v159_v17 }
  0x4e   :  { %286 = shalt.err (!%p283_p9)
}
  0x4f   :  { %s287_s25 = scalar_lea.hbm %s435_s2, 512 }
  0x50   :  { %p288_p10 = scmp.ne.s32.totalorder %s435_s2, %s287_s25  ;;  %p291_p11 = scmp.lt.u32.totalorder %s287_s25, %s435_s2 }
  0x52   :  { %p293_p12 = pnand %p291_p11, %p288_p10 }
  0x54   :  { %296 = shalt.err (!%p293_p12)
}
  0x55   :  { %175 = dma.vmem_to_hbm [thread:$0]  %s170_s21, 512, %s435_s2, [#allocation4], %s307_s0, %s307_s0, %s308_s5  }
  0x56   :  { %301 = dma.done.wait [#allocation4], 512  }
  0x57   :  { %302 = vsyncadd [#allocation4], 4294966784 }
  0x58   :  { %303 = dma.done.wait [#allocation9], 896  }
  0x59   :  { %304 = vsyncadd [#allocation9], 4294966400 }
  0x5a   :  { %194 = vsyncpa [#allocation3], 1 }
  0x5b   :  { %195 = vsyncpa [#allocation4], 1 }
  0x5c   :  { %196 = vsyncpa [#allocation9], 1 }
  0x5d   :  { %197 = vsyncpa [#allocation5], 1 }

</bundles_post_ra>
